<compile_context>
chip_gen: v6e
topology: v6e:2x2x1
jax: 0.10.0
libtpu: 0.0.40
codegen_flags: <defaults>
</compile_context>

<pallas_src>
import functools
import math

import jax
import jax.numpy as jnp
from jax.experimental import pallas as pl
from jax.experimental.pallas import tpu as pltpu


# ------------------------------- helpers ----------------------------------- #

def _pick_tile(n: int, cap: int = 256) -> int:
    """Largest tile (multiple of 8, <= cap) dividing n, else the full extent."""
    for t in (512, 256, 128, 64, 32, 16, 8):
        if t <= cap and n % t == 0:
            return t
    return n


def _vmem_limit(block_bytes: int) -> int:
    """Scoped-VMEM request: double-buffered blocks + temporaries headroom."""
    need = 4 * block_bytes + (2 << 20)
    return int(min(48 * 1024 * 1024, max(16 * 1024 * 1024, need)))


# ----------------------- fused QKV projection kernel ------------------------ #

def _qkv_proj_kernel(xq_ref, xk_ref, xv_ref, w_ref, b_ref, o_ref):
    # y_p = x_p @ W_p + b_p  for p in {q, k, v}; bf16 MXU operands, f32 accum.
    for idx, x_ref in enumerate((xq_ref, xk_ref, xv_ref)):
        x = x_ref[...].astype(w_ref.dtype)                       # f32 -> bf16
        y = jnp.dot(x, w_ref[idx], preferred_element_type=jnp.float32)
        o_ref[idx] = (y + b_ref[idx]).astype(o_ref.dtype)        # bf16 out


def qkv_projection(xq, xk, xv, w_qkv, b_qkv):
    """xq/xk/xv: (M, D) f32; w_qkv: (3, D, D) bf16; b_qkv: (3, 1, D) f32
       -> (3, M, D) bf16.  (Query weights are pre-scaled by 1/sqrt(dk).)"""
    M, D = xq.shape
    tm = _pick_tile(M, cap=512)
    grid = (M // tm,)
    # NOTE: D is kept whole in-block (fine up to D ~ 1-2K). For very large D,
    # add a K grid axis ("arbitrary") with an f32 accumulator + pl.when.

    block_bytes = 3 * tm * D * 4 + 3 * D * D * 2 + 3 * D * 4 + 3 * tm * D * 2
    flops = 3 * 2 * M * D * D
    bytes_accessed = 3 * M * D * 4 + 3 * D * D * 2 + 3 * D * 4 + 3 * M * D * 2

    return pl.pallas_call(
        _qkv_proj_kernel,
        out_shape=jax.ShapeDtypeStruct((3, M, D), jnp.bfloat16),
        grid_spec=pltpu.PrefetchScalarGridSpec(
            num_scalar_prefetch=0,
            grid=grid,
            in_specs=[
                pl.BlockSpec((tm, D), lambda i: (i, 0)),
                pl.BlockSpec((tm, D), lambda i: (i, 0)),
                pl.BlockSpec((tm, D), lambda i: (i, 0)),
                pl.BlockSpec((3, D, D), lambda i: (0, 0, 0)),    # resident weights
                pl.BlockSpec((3, 1, D), lambda i: (0, 0, 0)),    # resident bias
            ],
            out_specs=pl.BlockSpec((3, tm, D), lambda i: (0, i, 0)),
        ),
        compiler_params=pltpu.CompilerParams(
            dimension_semantics=("parallel",),
            vmem_limit_bytes=_vmem_limit(block_bytes)),
        cost_estimate=pl.CostEstimate(flops=flops, transcendentals=0,
                                      bytes_accessed=bytes_accessed),
    )(xq, xk, xv, w_qkv, b_qkv)


# --------------- fused attention + output-projection kernel ----------------- #

def _mha_attention_kernel(q_ref, k_ref, v_ref, wo_ref, bo_ref, o_ref, acc_ref,
                          *, num_heads, dk):
    ki = pl.program_id(1)

    @pl.when(ki == 0)
    def _init():
        acc_ref[...] = jnp.zeros_like(acc_ref)

    q = q_ref[...]          # (B, tq, D) bf16, already scaled by 1/sqrt(dk)
    k = k_ref[...]          # (B, tk, D) bf16
    v = v_ref[...]          # (B, tk, D) bf16

    # Per-head scores on the MXU (f32 accumulation).
    # TODO(synk): with dk=8 each MXU pass uses only 8 contraction columns;
    # production dims should make dk a multiple of 128 for full utilization.
    scores = []
    m = None
    for h in range(num_heads):
        sl = slice(h * dk, (h + 1) * dk)
        s_h = jnp.einsum('bqd,bkd->bqk', q[:, :, sl], k[:, :, sl],
                         preferred_element_type=jnp.float32)     # (B, tq, tk)
        scores.append(s_h)
        m_h = jnp.max(s_h, axis=0)                                # reduce batch
        m = m_h if m is None else jnp.maximum(m, m_h)

    # Legacy F.softmax implicit dim=0 on the (H*B, T, T) view: each (q, k)
    # element is normalized over all heads*batches, so it is exact within this
    # tile and needs no cross-tile softmax state.
    exps = []
    denom = None
    for s_h in scores:
        e_h = jnp.exp(s_h - m)                                    # f32, EUP
        exps.append(e_h)
        d_h = jnp.sum(e_h, axis=0)
        denom = d_h if denom is None else denom + d_h
    inv = pl.reciprocal(denom, approx=True)                       # (tq, tk) f32

    # Context contribution of this Tk tile, accumulated in (B, tq, D) layout.
    for h, e_h in enumerate(exps):
        sl = slice(h * dk, (h + 1) * dk)
        p_h = (e_h * inv).astype(v.dtype)                         # bf16 for MXU
        ctx_h = jnp.einsum('bqk,bkd->bqd', p_h, v[:, :, sl],
                           preferred_element_type=jnp.float32)    # (B, tq, dk)
        acc_ref[:, :, sl] += ctx_h

    # Finalize: fused output projection, single lane-dense (B, tq, D) store.
    @pl.when(ki == pl.num_programs(1) - 1)
    def _finalize():
        B, tq, D = acc_ref.shape
        ctx = acc_ref[...].reshape(B * tq, D).astype(wo_ref.dtype)
        out = jnp.dot(ctx, wo_ref[...], preferred_element_type=jnp.float32)
        out = out + bo_ref[...]
        o_ref[...] = out.reshape(B, tq, D).astype(o_ref.dtype)


def attention_with_output_proj(qkv, wo, bo, num_heads):
    """qkv: (3, B, T, D) bf16 (q pre-scaled); wo: (D, D) bf16; bo: (1, D) f32
       -> (B, T, D) f32: the full MultiHeadAttention output."""
    _, B, T, D = qkv.shape
    dk = D // num_heads
    tq = _pick_tile(T, cap=256)
    tk = _pick_tile(T, cap=256)
    grid = (T // tq, T // tk)

    kernel = functools.partial(_mha_attention_kernel,
                               num_heads=num_heads, dk=dk)

    block_bytes = (B * tq * D * 2 + 2 * B * tk * D * 2            # q, k, v tiles
                   + D * D * 2 + D * 4                            # wo, bo
                   + 2 * B * tq * D * 4                           # out tile + acc
                   + 2 * num_heads * B * tq * tk * 4)             # score/exp temps
    flops = 4 * B * T * T * D + 2 * B * T * D * D
    transcendentals = num_heads * B * T * T
    bytes_accessed = ((T // tq) * 2 * B * T * D * 2 + B * T * D * 2
                      + B * T * D * 4 + D * D * 2 + D * 4)

    return pl.pallas_call(
        kernel,
        out_shape=jax.ShapeDtypeStruct((B, T, D), jnp.float32),
        grid_spec=pltpu.PrefetchScalarGridSpec(
            num_scalar_prefetch=0,
            grid=grid,
            in_specs=[
                # Same stacked qkv array passed three times; the squeezed
                # leading index selects q (0), k (1), v (2).
                pl.BlockSpec((pl.Squeezed(), B, tq, D),
                             lambda qi, ki: (0, 0, qi, 0)),
                pl.BlockSpec((pl.Squeezed(), B, tk, D),
                             lambda qi, ki: (1, 0, ki, 0)),
                pl.BlockSpec((pl.Squeezed(), B, tk, D),
                             lambda qi, ki: (2, 0, ki, 0)),
                pl.BlockSpec((D, D), lambda qi, ki: (0, 0)),      # resident wo
                pl.BlockSpec((1, D), lambda qi, ki: (0, 0)),      # resident bo
            ],
            out_specs=pl.BlockSpec((B, tq, D), lambda qi, ki: (0, qi, 0)),
            scratch_shapes=[pltpu.VMEM((B, tq, D), jnp.float32)],
        ),
        compiler_params=pltpu.CompilerParams(
            dimension_semantics=("parallel", "arbitrary"),
            vmem_limit_bytes=_vmem_limit(block_bytes)),
        cost_estimate=pl.CostEstimate(flops=flops,
                                      transcendentals=transcendentals,
                                      bytes_accessed=bytes_accessed),
    )(qkv, qkv, qkv, wo, bo)


# ------------------------------ JAX wrapper --------------------------------- #

def multi_head_attention(params, query, key, value, num_heads):
    B, T, D = query.shape
    dk = D // num_heads
    scale = 1.0 / math.sqrt(dk)

    # Fold the 1/sqrt(dk) attention scale into the query projection: O(D^2)
    # once instead of an O(N*Tq*Tk) multiply on the score tensor.
    w_qkv = jnp.stack([params['wq'] * scale, params['wk'], params['wv']]
                      ).astype(jnp.bfloat16)                       # (3, D, D)
    b_qkv = jnp.stack([params['bq'] * scale, params['bk'], params['bv']]
                      ).reshape(3, 1, D).astype(jnp.float32)       # (3, 1, D)

    M = B * T
    qkv = qkv_projection(query.reshape(M, D), key.reshape(M, D),
                         value.reshape(M, D), w_qkv, b_qkv)        # (3, M, D) bf16
    qkv = qkv.reshape(3, B, T, D)      # free reshape; feature-minor in HBM

    wo = params['wo'].astype(jnp.bfloat16)
    bo = params['bo'].reshape(1, D).astype(jnp.float32)
    return attention_with_output_proj(qkv, wo, bo, num_heads)      # (B, T, D) f32


# --------------------------- pure-JAX reference ------------------------------ #

def reference_mha(params, query, key, value, num_heads):
    B, T, D = query.shape
    dk = D // num_heads

    def proj_split(x, w, b):
        y = (x @ w + b).reshape(B, T, num_heads, dk)
        return jnp.transpose(y, (2, 0, 1, 3)).reshape(num_heads * B, T, dk)

    q = proj_split(query, params['wq'], params['bq'])
    k = proj_split(key,   params['wk'], params['bk'])
    v = proj_split(value, params['wv'], params['bv'])

    s = jnp.einsum('nqd,nkd->nqk', q, k) / math.sqrt(dk)
    p = jax.nn.softmax(s, axis=0)            # torch legacy implicit dim=0 (3-D)
    attn = jnp.einsum('nqk,nkd->nqd', p, v)
    concat = jnp.transpose(attn.reshape(num_heads, B, T, dk),
                           (1, 2, 0, 3)).reshape(B * T, D)
    return (concat @ params['wo'] + params['bo']).reshape(B, T, D)


# ----------------------------------- main ------------------------------------ #

if __name__ == "__main__":
    B, T, DIM, H = 2, 8, 32, 4               # dk = 8

    root = jax.random.PRNGKey(0)
    ks = jax.random.split(root, 12)

    def w_init(k, din, dout):
        return jax.random.normal(k, (din, dout), jnp.float32) * 0.1

    def b_init(k, dout):
        return jax.random.normal(k, (dout,), jnp.float32) * 0.01

    params = {
        'wq': w_init(ks[0], DIM, DIM), 'bq': b_init(ks[1], DIM),
        'wk': w_init(ks[2], DIM, DIM), 'bk': b_init(ks[3], DIM),
        'wv': w_init(ks[4], DIM, DIM), 'bv': b_init(ks[5], DIM),
        'wo': w_init(ks[6], DIM, DIM), 'bo': b_init(ks[7], DIM),
    }

    query = jax.random.normal(ks[8],  (B, T, DIM), jnp.float32)
    key_  = jax.random.normal(ks[9],  (B, T, DIM), jnp.float32)
    value = jax.random.normal(ks[10], (B, T, DIM), jnp.float32)

    mha = jax.jit(multi_head_attention, static_argnames=('num_heads',))
    out = jax.block_until_ready(mha(params, query, key_, value, num_heads=H))

    ref = reference_mha(params, query, key_, value, H)
    assert out.shape == (B, T, DIM)
    assert jnp.allclose(out, ref, rtol=2e-2, atol=2e-2), "mismatch vs reference"

    print("KERNEL_OK")
</pallas_src>

<mosaic_0001>
module attributes {stable_mosaic.version = 11 : i64} {
  func.func @_qkv_proj_kernel(%arg0: i32, %arg1: memref<16x32xf32, #tpu.memory_space<vmem>>, %arg2: memref<16x32xf32, #tpu.memory_space<vmem>>, %arg3: memref<16x32xf32, #tpu.memory_space<vmem>>, %arg4: memref<3x32x32xbf16, #tpu.memory_space<vmem>>, %arg5: memref<3x1x32xf32, #tpu.memory_space<vmem>>, %arg6: memref<3x16x32xbf16, #tpu.memory_space<vmem>>) attributes {dimension_semantics = [#tpu.dimension_semantics<parallel>], iteration_bounds = array<i64: 1>, scalar_prefetch = 0 : i64, scratch_operands = 0 : i64, tpu.core_type = #tpu.core_type<tc>, window_params = [{transform_indices = @transform_0, window_bounds = array<i64: 16, 32>}, {transform_indices = @transform_1, window_bounds = array<i64: 16, 32>}, {transform_indices = @transform_2, window_bounds = array<i64: 16, 32>}, {pipeline_mode = #tpu.pipeline_mode<synchronous>, transform_indices = @transform_3, window_bounds = array<i64: 3, 32, 32>}, {pipeline_mode = #tpu.pipeline_mode<synchronous>, transform_indices = @transform_4, window_bounds = array<i64: 3, 1, 32>}, {transform_indices = @transform_5, window_bounds = array<i64: 3, 16, 32>}]} {
    %c0 = arith.constant 0 : index
    %c0_0 = arith.constant 0 : index
    %0 = vector.load %arg1[%c0, %c0_0] : memref<16x32xf32, #tpu.memory_space<vmem>>, vector<16x32xf32>
    %1 = arith.truncf %0 : vector<16x32xf32> to vector<16x32xbf16>
    %c0_1 = arith.constant 0 : index
    %c0_2 = arith.constant 0 : index
    %c0_3 = arith.constant 0 : index
    %2 = vector.load %arg4[%c0_1, %c0_2, %c0_3] : memref<3x32x32xbf16, #tpu.memory_space<vmem>>, vector<1x32x32xbf16>
    %3 = vector.shape_cast %2 : vector<1x32x32xbf16> to vector<32x32xbf16>
    %cst = arith.constant dense<0.000000e+00> : vector<16x32xf32>
    %4 = tpu.matmul %1, %3, %cst {dimension_numbers = #tpu.dot_dimension_numbers<[1], [0], [0], [1], [0, 0, 1, 1], [], []>} : vector<16x32xbf16>, vector<32x32xbf16>, vector<16x32xf32> -> vector<16x32xf32>
    %c0_4 = arith.constant 0 : index
    %c0_5 = arith.constant 0 : index
    %c0_6 = arith.constant 0 : index
    %5 = vector.load %arg5[%c0_4, %c0_5, %c0_6] : memref<3x1x32xf32, #tpu.memory_space<vmem>>, vector<1x1x32xf32>
    %6 = vector.shape_cast %5 : vector<1x1x32xf32> to vector<1x32xf32>
    %7 = vector.broadcast %6 : vector<1x32xf32> to vector<16x32xf32>
    %8 = arith.addf %4, %7 : vector<16x32xf32>
    %9 = arith.truncf %8 : vector<16x32xf32> to vector<16x32xbf16>
    %c0_7 = arith.constant 0 : index
    %c0_8 = arith.constant 0 : index
    %c0_9 = arith.constant 0 : index
    %10 = vector.load %arg6[%c0_7, %c0_8, %c0_9] : memref<3x16x32xbf16, #tpu.memory_space<vmem>>, vector<1x16x32xbf16>
    %11 = vector.shape_cast %10 : vector<1x16x32xbf16> to vector<16x32xbf16>
    %12 = vector.shape_cast %9 : vector<16x32xbf16> to vector<1x16x32xbf16>
    tpu.vector_store %arg6[%c0_7, %c0_8, %c0_9], %12 {strides = array<i32>} : memref<3x16x32xbf16, #tpu.memory_space<vmem>>, vector<1x16x32xbf16>,
    %c0_10 = arith.constant 0 : index
    %c0_11 = arith.constant 0 : index
    %13 = vector.load %arg2[%c0_10, %c0_11] : memref<16x32xf32, #tpu.memory_space<vmem>>, vector<16x32xf32>
    %14 = arith.truncf %13 : vector<16x32xf32> to vector<16x32xbf16>
    %c1 = arith.constant 1 : index
    %c0_12 = arith.constant 0 : index
    %c0_13 = arith.constant 0 : index
    %15 = vector.load %arg4[%c1, %c0_12, %c0_13] : memref<3x32x32xbf16, #tpu.memory_space<vmem>>, vector<1x32x32xbf16>
    %16 = vector.shape_cast %15 : vector<1x32x32xbf16> to vector<32x32xbf16>
    %cst_14 = arith.constant dense<0.000000e+00> : vector<16x32xf32>
    %17 = tpu.matmul %14, %16, %cst_14 {dimension_numbers = #tpu.dot_dimension_numbers<[1], [0], [0], [1], [0, 0, 1, 1], [], []>} : vector<16x32xbf16>, vector<32x32xbf16>, vector<16x32xf32> -> vector<16x32xf32>
    %c1_15 = arith.constant 1 : index
    %c0_16 = arith.constant 0 : index
    %c0_17 = arith.constant 0 : index
    %18 = vector.load %arg5[%c1_15, %c0_16, %c0_17] : memref<3x1x32xf32, #tpu.memory_space<vmem>>, vector<1x1x32xf32>
    %19 = vector.shape_cast %18 : vector<1x1x32xf32> to vector<1x32xf32>
    %20 = vector.broadcast %19 : vector<1x32xf32> to vector<16x32xf32>
    %21 = arith.addf %17, %20 : vector<16x32xf32>
    %22 = arith.truncf %21 : vector<16x32xf32> to vector<16x32xbf16>
    %c1_18 = arith.constant 1 : index
    %c0_19 = arith.constant 0 : index
    %c0_20 = arith.constant 0 : index
    %23 = vector.load %arg6[%c1_18, %c0_19, %c0_20] : memref<3x16x32xbf16, #tpu.memory_space<vmem>>, vector<1x16x32xbf16>
    %24 = vector.shape_cast %23 : vector<1x16x32xbf16> to vector<16x32xbf16>
    %25 = vector.shape_cast %22 : vector<16x32xbf16> to vector<1x16x32xbf16>
    tpu.vector_store %arg6[%c1_18, %c0_19, %c0_20], %25 {strides = array<i32>} : memref<3x16x32xbf16, #tpu.memory_space<vmem>>, vector<1x16x32xbf16>,
    %c0_21 = arith.constant 0 : index
    %c0_22 = arith.constant 0 : index
    %26 = vector.load %arg3[%c0_21, %c0_22] : memref<16x32xf32, #tpu.memory_space<vmem>>, vector<16x32xf32>
    %27 = arith.truncf %26 : vector<16x32xf32> to vector<16x32xbf16>
    %c2 = arith.constant 2 : index
    %c0_23 = arith.constant 0 : index
    %c0_24 = arith.constant 0 : index
    %28 = vector.load %arg4[%c2, %c0_23, %c0_24] : memref<3x32x32xbf16, #tpu.memory_space<vmem>>, vector<1x32x32xbf16>
    %29 = vector.shape_cast %28 : vector<1x32x32xbf16> to vector<32x32xbf16>
    %cst_25 = arith.constant dense<0.000000e+00> : vector<16x32xf32>
    %30 = tpu.matmul %27, %29, %cst_25 {dimension_numbers = #tpu.dot_dimension_numbers<[1], [0], [0], [1], [0, 0, 1, 1], [], []>} : vector<16x32xbf16>, vector<32x32xbf16>, vector<16x32xf32> -> vector<16x32xf32>
    %c2_26 = arith.constant 2 : index
    %c0_27 = arith.constant 0 : index
    %c0_28 = arith.constant 0 : index
    %31 = vector.load %arg5[%c2_26, %c0_27, %c0_28] : memref<3x1x32xf32, #tpu.memory_space<vmem>>, vector<1x1x32xf32>
    %32 = vector.shape_cast %31 : vector<1x1x32xf32> to vector<1x32xf32>
    %33 = vector.broadcast %32 : vector<1x32xf32> to vector<16x32xf32>
    %34 = arith.addf %30, %33 : vector<16x32xf32>
    %35 = arith.truncf %34 : vector<16x32xf32> to vector<16x32xbf16>
    %c2_29 = arith.constant 2 : index
    %c0_30 = arith.constant 0 : index
    %c0_31 = arith.constant 0 : index
    %36 = vector.load %arg6[%c2_29, %c0_30, %c0_31] : memref<3x16x32xbf16, #tpu.memory_space<vmem>>, vector<1x16x32xbf16>
    %37 = vector.shape_cast %36 : vector<1x16x32xbf16> to vector<16x32xbf16>
    %38 = vector.shape_cast %35 : vector<16x32xbf16> to vector<1x16x32xbf16>
    tpu.vector_store %arg6[%c2_29, %c0_30, %c0_31], %38 {strides = array<i32>} : memref<3x16x32xbf16, #tpu.memory_space<vmem>>, vector<1x16x32xbf16>,
    return
  }
  func.func @transform_0(%arg0: i32) -> (i32, i32) {
    %c0_i32 = arith.constant 0 : i32
    %c0_i32_0 = arith.constant 0 : i32
    return %arg0, %c0_i32 : i32, i32
  }
  func.func @transform_1(%arg0: i32) -> (i32, i32) {
    %c0_i32 = arith.constant 0 : i32
    %c0_i32_0 = arith.constant 0 : i32
    return %arg0, %c0_i32 : i32, i32
  }
  func.func @transform_2(%arg0: i32) -> (i32, i32) {
    %c0_i32 = arith.constant 0 : i32
    %c0_i32_0 = arith.constant 0 : i32
    return %arg0, %c0_i32 : i32, i32
  }
  func.func @transform_3(%arg0: i32) -> (i32, i32, i32) {
    %c0_i32 = arith.constant 0 : i32
    %c0_i32_0 = arith.constant 0 : i32
    %c0_i32_1 = arith.constant 0 : i32
    %c0_i32_2 = arith.constant 0 : i32
    return %c0_i32, %c0_i32_0, %c0_i32_1 : i32, i32, i32
  }
  func.func @transform_4(%arg0: i32) -> (i32, i32, i32) {
    %c0_i32 = arith.constant 0 : i32
    %c0_i32_0 = arith.constant 0 : i32
    %c0_i32_1 = arith.constant 0 : i32
    %c0_i32_2 = arith.constant 0 : i32
    return %c0_i32, %c0_i32_0, %c0_i32_1 : i32, i32, i32
  }
  func.func @transform_5(%arg0: i32) -> (i32, i32, i32) {
    %c0_i32 = arith.constant 0 : i32
    %c0_i32_0 = arith.constant 0 : i32
    %c0_i32_1 = arith.constant 0 : i32
    return %c0_i32, %arg0, %c0_i32_0 : i32, i32, i32
  }
}

module attributes {stable_mosaic.version = 11 : i64} {
  func.func @_mha_attention_kernel(%arg0: i32, %arg1: i32, %arg2: memref<1x2x8x32xbf16, #tpu.memory_space<vmem>>, %arg3: memref<1x2x8x32xbf16, #tpu.memory_space<vmem>>, %arg4: memref<1x2x8x32xbf16, #tpu.memory_space<vmem>>, %arg5: memref<32x32xbf16, #tpu.memory_space<vmem>>, %arg6: memref<1x32xf32, #tpu.memory_space<vmem>>, %arg7: memref<2x8x32xf32, #tpu.memory_space<vmem>>, %arg8: memref<2x8x32xf32, #tpu.memory_space<vmem>>) attributes {dimension_semantics = [#tpu.dimension_semantics<parallel>, #tpu.dimension_semantics<arbitrary>], iteration_bounds = array<i64: 1, 1>, scalar_prefetch = 0 : i64, scratch_operands = 1 : i64, tpu.core_type = #tpu.core_type<tc>, window_params = [{transform_indices = @transform_0, window_bounds = array<i64: 1, 2, 8, 32>}, {transform_indices = @transform_1, window_bounds = array<i64: 1, 2, 8, 32>}, {transform_indices = @transform_2, window_bounds = array<i64: 1, 2, 8, 32>}, {pipeline_mode = #tpu.pipeline_mode<synchronous>, transform_indices = @transform_3, window_bounds = array<i64: 32, 32>}, {pipeline_mode = #tpu.pipeline_mode<synchronous>, transform_indices = @transform_4, window_bounds = array<i64: 1, 32>}, {transform_indices = @transform_5, window_bounds = array<i64: 2, 8, 32>}]} {
    %c0_i32 = arith.constant 0 : i32
    %0 = arith.cmpi eq, %arg1, %c0_i32 : i32
    %1 = arith.extui %0 : i1 to i32
    %c0_i32_0 = arith.constant 0 : i32
    %2 = arith.cmpi ne, %1, %c0_i32_0 : i32
    scf.if %2 {
      %cst_50 = arith.constant 0.000000e+00 : f32
      %91 = vector.broadcast %cst_50 : f32 to vector<2x8x32xf32>
      %c0_51 = arith.constant 0 : index
      %c0_52 = arith.constant 0 : index
      %c0_53 = arith.constant 0 : index
      %92 = vector.load %arg8[%c0_51, %c0_52, %c0_53] : memref<2x8x32xf32, #tpu.memory_space<vmem>>, vector<2x8x32xf32>
      tpu.vector_store %arg8[%c0_51, %c0_52, %c0_53], %91 {strides = array<i32>} : memref<2x8x32xf32, #tpu.memory_space<vmem>>, vector<2x8x32xf32>,
    } else {
    }
    %c0 = arith.constant 0 : index
    %c0_1 = arith.constant 0 : index
    %c0_2 = arith.constant 0 : index
    %c0_3 = arith.constant 0 : index
    %3 = vector.load %arg2[%c0, %c0_1, %c0_2, %c0_3] : memref<1x2x8x32xbf16, #tpu.memory_space<vmem>>, vector<1x2x8x32xbf16>
    %4 = vector.shape_cast %3 : vector<1x2x8x32xbf16> to vector<2x8x32xbf16>
    %c0_4 = arith.constant 0 : index
    %c0_5 = arith.constant 0 : index
    %c0_6 = arith.constant 0 : index
    %c0_7 = arith.constant 0 : index
    %5 = vector.load %arg3[%c0_4, %c0_5, %c0_6, %c0_7] : memref<1x2x8x32xbf16, #tpu.memory_space<vmem>>, vector<1x2x8x32xbf16>
    %6 = vector.shape_cast %5 : vector<1x2x8x32xbf16> to vector<2x8x32xbf16>
    %c0_8 = arith.constant 0 : index
    %c0_9 = arith.constant 0 : index
    %c0_10 = arith.constant 0 : index
    %c0_11 = arith.constant 0 : index
    %7 = vector.load %arg4[%c0_8, %c0_9, %c0_10, %c0_11] : memref<1x2x8x32xbf16, #tpu.memory_space<vmem>>, vector<1x2x8x32xbf16>
    %8 = vector.shape_cast %7 : vector<1x2x8x32xbf16> to vector<2x8x32xbf16>
    %9 = vector.extract_strided_slice %4 {offsets = [0, 0, 0], sizes = [2, 8, 8], strides = [1, 1, 1]} : vector<2x8x32xbf16> to vector<2x8x8xbf16>
    %10 = vector.extract_strided_slice %6 {offsets = [0, 0, 0], sizes = [2, 8, 8], strides = [1, 1, 1]} : vector<2x8x32xbf16> to vector<2x8x8xbf16>
    "tpu.trace_start"() <{level = 10 : i32, message = "bqd,bkd->bqk"}> : () -> ()
    %cst = arith.constant dense<0.000000e+00> : vector<2x8x8xf32>
    %11 = tpu.matmul %9, %10, %cst {dimension_numbers = #tpu.dot_dimension_numbers<[2], [2], [1], [1], [0, 0, 0, 1, 1, 1], [0], [0]>} : vector<2x8x8xbf16>, vector<2x8x8xbf16>, vector<2x8x8xf32> -> vector<2x8x8xf32>
    "tpu.trace_stop"() : () -> ()
    %cst_12 = arith.constant dense<0xFF800000> : vector<8x8xf32>
    %12 = vector.multi_reduction <maximumf>, %11, %cst_12 [0] : vector<2x8x8xf32> to vector<8x8xf32>
    %13 = vector.extract_strided_slice %4 {offsets = [0, 0, 8], sizes = [2, 8, 8], strides = [1, 1, 1]} : vector<2x8x32xbf16> to vector<2x8x8xbf16>
    %14 = vector.extract_strided_slice %6 {offsets = [0, 0, 8], sizes = [2, 8, 8], strides = [1, 1, 1]} : vector<2x8x32xbf16> to vector<2x8x8xbf16>
    "tpu.trace_start"() <{level = 10 : i32, message = "bqd,bkd->bqk"}> : () -> ()
    %cst_13 = arith.constant dense<0.000000e+00> : vector<2x8x8xf32>
    %15 = tpu.matmul %13, %14, %cst_13 {dimension_numbers = #tpu.dot_dimension_numbers<[2], [2], [1], [1], [0, 0, 0, 1, 1, 1], [0], [0]>} : vector<2x8x8xbf16>, vector<2x8x8xbf16>, vector<2x8x8xf32> -> vector<2x8x8xf32>
    "tpu.trace_stop"() : () -> ()
    %cst_14 = arith.constant dense<0xFF800000> : vector<8x8xf32>
    %16 = vector.multi_reduction <maximumf>, %15, %cst_14 [0] : vector<2x8x8xf32> to vector<8x8xf32>
    %17 = arith.maximumf %12, %16 : vector<8x8xf32>
    %18 = vector.extract_strided_slice %4 {offsets = [0, 0, 16], sizes = [2, 8, 8], strides = [1, 1, 1]} : vector<2x8x32xbf16> to vector<2x8x8xbf16>
    %19 = vector.extract_strided_slice %6 {offsets = [0, 0, 16], sizes = [2, 8, 8], strides = [1, 1, 1]} : vector<2x8x32xbf16> to vector<2x8x8xbf16>
    "tpu.trace_start"() <{level = 10 : i32, message = "bqd,bkd->bqk"}> : () -> ()
    %cst_15 = arith.constant dense<0.000000e+00> : vector<2x8x8xf32>
    %20 = tpu.matmul %18, %19, %cst_15 {dimension_numbers = #tpu.dot_dimension_numbers<[2], [2], [1], [1], [0, 0, 0, 1, 1, 1], [0], [0]>} : vector<2x8x8xbf16>, vector<2x8x8xbf16>, vector<2x8x8xf32> -> vector<2x8x8xf32>
    "tpu.trace_stop"() : () -> ()
    %cst_16 = arith.constant dense<0xFF800000> : vector<8x8xf32>
    %21 = vector.multi_reduction <maximumf>, %20, %cst_16 [0] : vector<2x8x8xf32> to vector<8x8xf32>
    %22 = arith.maximumf %17, %21 : vector<8x8xf32>
    %23 = vector.extract_strided_slice %4 {offsets = [0, 0, 24], sizes = [2, 8, 8], strides = [1, 1, 1]} : vector<2x8x32xbf16> to vector<2x8x8xbf16>
    %24 = vector.extract_strided_slice %6 {offsets = [0, 0, 24], sizes = [2, 8, 8], strides = [1, 1, 1]} : vector<2x8x32xbf16> to vector<2x8x8xbf16>
    "tpu.trace_start"() <{level = 10 : i32, message = "bqd,bkd->bqk"}> : () -> ()
    %cst_17 = arith.constant dense<0.000000e+00> : vector<2x8x8xf32>
    %25 = tpu.matmul %23, %24, %cst_17 {dimension_numbers = #tpu.dot_dimension_numbers<[2], [2], [1], [1], [0, 0, 0, 1, 1, 1], [0], [0]>} : vector<2x8x8xbf16>, vector<2x8x8xbf16>, vector<2x8x8xf32> -> vector<2x8x8xf32>
    "tpu.trace_stop"() : () -> ()
    %cst_18 = arith.constant dense<0xFF800000> : vector<8x8xf32>
    %26 = vector.multi_reduction <maximumf>, %25, %cst_18 [0] : vector<2x8x8xf32> to vector<8x8xf32>
    %27 = arith.maximumf %22, %26 : vector<8x8xf32>
    %28 = vector.shape_cast %27 : vector<8x8xf32> to vector<1x8x8xf32>
    %29 = vector.broadcast %28 : vector<1x8x8xf32> to vector<2x8x8xf32>
    %30 = arith.subf %11, %29 : vector<2x8x8xf32>
    %31 = math.exp %30 : vector<2x8x8xf32>
    %cst_19 = arith.constant dense<0.000000e+00> : vector<8x8xf32>
    %32 = vector.multi_reduction <add>, %31, %cst_19 [0] : vector<2x8x8xf32> to vector<8x8xf32>
    %33 = vector.shape_cast %27 : vector<8x8xf32> to vector<1x8x8xf32>
    %34 = vector.broadcast %33 : vector<1x8x8xf32> to vector<2x8x8xf32>
    %35 = arith.subf %15, %34 : vector<2x8x8xf32>
    %36 = math.exp %35 : vector<2x8x8xf32>
    %cst_20 = arith.constant dense<0.000000e+00> : vector<8x8xf32>
    %37 = vector.multi_reduction <add>, %36, %cst_20 [0] : vector<2x8x8xf32> to vector<8x8xf32>
    %38 = arith.addf %32, %37 : vector<8x8xf32>
    %39 = vector.shape_cast %27 : vector<8x8xf32> to vector<1x8x8xf32>
    %40 = vector.broadcast %39 : vector<1x8x8xf32> to vector<2x8x8xf32>
    %41 = arith.subf %20, %40 : vector<2x8x8xf32>
    %42 = math.exp %41 : vector<2x8x8xf32>
    %cst_21 = arith.constant dense<0.000000e+00> : vector<8x8xf32>
    %43 = vector.multi_reduction <add>, %42, %cst_21 [0] : vector<2x8x8xf32> to vector<8x8xf32>
    %44 = arith.addf %38, %43 : vector<8x8xf32>
    %45 = vector.shape_cast %27 : vector<8x8xf32> to vector<1x8x8xf32>
    %46 = vector.broadcast %45 : vector<1x8x8xf32> to vector<2x8x8xf32>
    %47 = arith.subf %25, %46 : vector<2x8x8xf32>
    %48 = math.exp %47 : vector<2x8x8xf32>
    %cst_22 = arith.constant dense<0.000000e+00> : vector<8x8xf32>
    %49 = vector.multi_reduction <add>, %48, %cst_22 [0] : vector<2x8x8xf32> to vector<8x8xf32>
    %50 = arith.addf %44, %49 : vector<8x8xf32>
    %51 = tpu.reciprocal %50 {approx = true} : vector<8x8xf32> -> vector<8x8xf32>
    %52 = vector.shape_cast %51 : vector<8x8xf32> to vector<1x8x8xf32>
    %53 = vector.broadcast %52 : vector<1x8x8xf32> to vector<2x8x8xf32>
    %54 = arith.mulf %31, %53 : vector<2x8x8xf32>
    %55 = arith.truncf %54 : vector<2x8x8xf32> to vector<2x8x8xbf16>
    %56 = vector.extract_strided_slice %8 {offsets = [0, 0, 0], sizes = [2, 8, 8], strides = [1, 1, 1]} : vector<2x8x32xbf16> to vector<2x8x8xbf16>
    "tpu.trace_start"() <{level = 10 : i32, message = "bqk,bkd->bqd"}> : () -> ()
    %cst_23 = arith.constant dense<0.000000e+00> : vector<2x8x8xf32>
    %57 = tpu.matmul %55, %56, %cst_23 {dimension_numbers = #tpu.dot_dimension_numbers<[2], [1], [1], [2], [0, 0, 0, 1, 1, 2], [0], [0]>} : vector<2x8x8xbf16>, vector<2x8x8xbf16>, vector<2x8x8xf32> -> vector<2x8x8xf32>
    "tpu.trace_stop"() : () -> ()
    %c0_24 = arith.constant 0 : index
    %c0_25 = arith.constant 0 : index
    %c0_26 = arith.constant 0 : index
    %58 = vector.load %arg8[%c0_24, %c0_25, %c0_26] : memref<2x8x32xf32, #tpu.memory_space<vmem>>, vector<2x8x8xf32>
    %59 = arith.addf %58, %57 : vector<2x8x8xf32>
    %c0_27 = arith.constant 0 : index
    %c0_28 = arith.constant 0 : index
    %c0_29 = arith.constant 0 : index
    %60 = vector.load %arg8[%c0_27, %c0_28, %c0_29] : memref<2x8x32xf32, #tpu.memory_space<vmem>>, vector<2x8x8xf32>
    tpu.vector_store %arg8[%c0_27, %c0_28, %c0_29], %59 {strides = array<i32>} : memref<2x8x32xf32, #tpu.memory_space<vmem>>, vector<2x8x8xf32>,
    %61 = vector.shape_cast %51 : vector<8x8xf32> to vector<1x8x8xf32>
    %62 = vector.broadcast %61 : vector<1x8x8xf32> to vector<2x8x8xf32>
    %63 = arith.mulf %36, %62 : vector<2x8x8xf32>
    %64 = arith.truncf %63 : vector<2x8x8xf32> to vector<2x8x8xbf16>
    %65 = vector.extract_strided_slice %8 {offsets = [0, 0, 8], sizes = [2, 8, 8], strides = [1, 1, 1]} : vector<2x8x32xbf16> to vector<2x8x8xbf16>
    "tpu.trace_start"() <{level = 10 : i32, message = "bqk,bkd->bqd"}> : () -> ()
    %cst_30 = arith.constant dense<0.000000e+00> : vector<2x8x8xf32>
    %66 = tpu.matmul %64, %65, %cst_30 {dimension_numbers = #tpu.dot_dimension_numbers<[2], [1], [1], [2], [0, 0, 0, 1, 1, 2], [0], [0]>} : vector<2x8x8xbf16>, vector<2x8x8xbf16>, vector<2x8x8xf32> -> vector<2x8x8xf32>
    "tpu.trace_stop"() : () -> ()
    %c0_31 = arith.constant 0 : index
    %c0_32 = arith.constant 0 : index
    %c8 = arith.constant 8 : index
    %67 = vector.load %arg8[%c0_31, %c0_32, %c8] : memref<2x8x32xf32, #tpu.memory_space<vmem>>, vector<2x8x8xf32>
    %68 = arith.addf %67, %66 : vector<2x8x8xf32>
    %c0_33 = arith.constant 0 : index
    %c0_34 = arith.constant 0 : index
    %c8_35 = arith.constant 8 : index
    %69 = vector.load %arg8[%c0_33, %c0_34, %c8_35] : memref<2x8x32xf32, #tpu.memory_space<vmem>>, vector<2x8x8xf32>
    tpu.vector_store %arg8[%c0_33, %c0_34, %c8_35], %68 {strides = array<i32>} : memref<2x8x32xf32, #tpu.memory_space<vmem>>, vector<2x8x8xf32>,
    %70 = vector.shape_cast %51 : vector<8x8xf32> to vector<1x8x8xf32>
    %71 = vector.broadcast %70 : vector<1x8x8xf32> to vector<2x8x8xf32>
    %72 = arith.mulf %42, %71 : vector<2x8x8xf32>
    %73 = arith.truncf %72 : vector<2x8x8xf32> to vector<2x8x8xbf16>
    %74 = vector.extract_strided_slice %8 {offsets = [0, 0, 16], sizes = [2, 8, 8], strides = [1, 1, 1]} : vector<2x8x32xbf16> to vector<2x8x8xbf16>
    "tpu.trace_start"() <{level = 10 : i32, message = "bqk,bkd->bqd"}> : () -> ()
    %cst_36 = arith.constant dense<0.000000e+00> : vector<2x8x8xf32>
    %75 = tpu.matmul %73, %74, %cst_36 {dimension_numbers = #tpu.dot_dimension_numbers<[2], [1], [1], [2], [0, 0, 0, 1, 1, 2], [0], [0]>} : vector<2x8x8xbf16>, vector<2x8x8xbf16>, vector<2x8x8xf32> -> vector<2x8x8xf32>
    "tpu.trace_stop"() : () -> ()
    %c0_37 = arith.constant 0 : index
    %c0_38 = arith.constant 0 : index
    %c16 = arith.constant 16 : index
    %76 = vector.load %arg8[%c0_37, %c0_38, %c16] : memref<2x8x32xf32, #tpu.memory_space<vmem>>, vector<2x8x8xf32>
    %77 = arith.addf %76, %75 : vector<2x8x8xf32>
    %c0_39 = arith.constant 0 : index
    %c0_40 = arith.constant 0 : index
    %c16_41 = arith.constant 16 : index
    %78 = vector.load %arg8[%c0_39, %c0_40, %c16_41] : memref<2x8x32xf32, #tpu.memory_space<vmem>>, vector<2x8x8xf32>
    tpu.vector_store %arg8[%c0_39, %c0_40, %c16_41], %77 {strides = array<i32>} : memref<2x8x32xf32, #tpu.memory_space<vmem>>, vector<2x8x8xf32>,
    %79 = vector.shape_cast %51 : vector<8x8xf32> to vector<1x8x8xf32>
    %80 = vector.broadcast %79 : vector<1x8x8xf32> to vector<2x8x8xf32>
    %81 = arith.mulf %48, %80 : vector<2x8x8xf32>
    %82 = arith.truncf %81 : vector<2x8x8xf32> to vector<2x8x8xbf16>
    %83 = vector.extract_strided_slice %8 {offsets = [0, 0, 24], sizes = [2, 8, 8], strides = [1, 1, 1]} : vector<2x8x32xbf16> to vector<2x8x8xbf16>
    "tpu.trace_start"() <{level = 10 : i32, message = "bqk,bkd->bqd"}> : () -> ()
    %cst_42 = arith.constant dense<0.000000e+00> : vector<2x8x8xf32>
    %84 = tpu.matmul %82, %83, %cst_42 {dimension_numbers = #tpu.dot_dimension_numbers<[2], [1], [1], [2], [0, 0, 0, 1, 1, 2], [0], [0]>} : vector<2x8x8xbf16>, vector<2x8x8xbf16>, vector<2x8x8xf32> -> vector<2x8x8xf32>
    "tpu.trace_stop"() : () -> ()
    %c0_43 = arith.constant 0 : index
    %c0_44 = arith.constant 0 : index
    %c24 = arith.constant 24 : index
    %85 = vector.load %arg8[%c0_43, %c0_44, %c24] : memref<2x8x32xf32, #tpu.memory_space<vmem>>, vector<2x8x8xf32>
    %86 = arith.addf %85, %84 : vector<2x8x8xf32>
    %c0_45 = arith.constant 0 : index
    %c0_46 = arith.constant 0 : index
    %c24_47 = arith.constant 24 : index
    %87 = vector.load %arg8[%c0_45, %c0_46, %c24_47] : memref<2x8x32xf32, #tpu.memory_space<vmem>>, vector<2x8x8xf32>
    tpu.vector_store %arg8[%c0_45, %c0_46, %c24_47], %86 {strides = array<i32>} : memref<2x8x32xf32, #tpu.memory_space<vmem>>, vector<2x8x8xf32>,
    %c0_i32_48 = arith.constant 0 : i32
    %88 = arith.cmpi eq, %arg1, %c0_i32_48 : i32
    %89 = arith.extui %88 : i1 to i32
    %c0_i32_49 = arith.constant 0 : i32
    %90 = arith.cmpi ne, %89, %c0_i32_49 : i32
    scf.if %90 {
      %c0_50 = arith.constant 0 : index
      %c0_51 = arith.constant 0 : index
      %c0_52 = arith.constant 0 : index
      %91 = vector.load %arg8[%c0_50, %c0_51, %c0_52] : memref<2x8x32xf32, #tpu.memory_space<vmem>>, vector<2x8x32xf32>
      %92 = vector.shape_cast %91 : vector<2x8x32xf32> to vector<16x32xf32>
      %93 = arith.truncf %92 : vector<16x32xf32> to vector<16x32xbf16>
      %c0_53 = arith.constant 0 : index
      %c0_54 = arith.constant 0 : index
      %94 = vector.load %arg5[%c0_53, %c0_54] : memref<32x32xbf16, #tpu.memory_space<vmem>>, vector<32x32xbf16>
      %cst_55 = arith.constant dense<0.000000e+00> : vector<16x32xf32>
      %95 = tpu.matmul %93, %94, %cst_55 {dimension_numbers = #tpu.dot_dimension_numbers<[1], [0], [0], [1], [0, 0, 1, 1], [], []>} : vector<16x32xbf16>, vector<32x32xbf16>, vector<16x32xf32> -> vector<16x32xf32>
      %c0_56 = arith.constant 0 : index
      %c0_57 = arith.constant 0 : index
      %96 = vector.load %arg6[%c0_56, %c0_57] : memref<1x32xf32, #tpu.memory_space<vmem>>, vector<1x32xf32>
      %97 = vector.broadcast %96 : vector<1x32xf32> to vector<16x32xf32>
      %98 = arith.addf %95, %97 : vector<16x32xf32>
      %99 = vector.shape_cast %98 : vector<16x32xf32> to vector<2x8x32xf32>
      %c0_58 = arith.constant 0 : index
      %c0_59 = arith.constant 0 : index
      %c0_60 = arith.constant 0 : index
      %100 = vector.load %arg7[%c0_58, %c0_59, %c0_60] : memref<2x8x32xf32, #tpu.memory_space<vmem>>, vector<2x8x32xf32>
      tpu.vector_store %arg7[%c0_58, %c0_59, %c0_60], %99 {strides = array<i32>} : memref<2x8x32xf32, #tpu.memory_space<vmem>>, vector<2x8x32xf32>,
    } else {
    }
    return
  }
  func.func @transform_0(%arg0: i32, %arg1: i32) -> (i32, i32, i32, i32) {
    %c0_i32 = arith.constant 0 : i32
    %c0_i32_0 = arith.constant 0 : i32
    %c0_i32_1 = arith.constant 0 : i32
    %c0_i32_2 = arith.constant 0 : i32
    return %c0_i32, %c0_i32_0, %arg0, %c0_i32_1 : i32, i32, i32, i32
  }
  func.func @transform_1(%arg0: i32, %arg1: i32) -> (i32, i32, i32, i32) {
    %c1_i32 = arith.constant 1 : i32
    %c0_i32 = arith.constant 0 : i32
    %c0_i32_0 = arith.constant 0 : i32
    %c0_i32_1 = arith.constant 0 : i32
    return %c1_i32, %c0_i32, %arg1, %c0_i32_0 : i32, i32, i32, i32
  }
  func.func @transform_2(%arg0: i32, %arg1: i32) -> (i32, i32, i32, i32) {
    %c2_i32 = arith.constant 2 : i32
    %c0_i32 = arith.constant 0 : i32
    %c0_i32_0 = arith.constant 0 : i32
    %c0_i32_1 = arith.constant 0 : i32
    return %c2_i32, %c0_i32, %arg1, %c0_i32_0 : i32, i32, i32, i32
  }
  func.func @transform_3(%arg0: i32, %arg1: i32) -> (i32, i32) {
    %c0_i32 = arith.constant 0 : i32
    %c0_i32_0 = arith.constant 0 : i32
    %c0_i32_1 = arith.constant 0 : i32
    return %c0_i32, %c0_i32_0 : i32, i32
  }
  func.func @transform_4(%arg0: i32, %arg1: i32) -> (i32, i32) {
    %c0_i32 = arith.constant 0 : i32
    %c0_i32_0 = arith.constant 0 : i32
    %c0_i32_1 = arith.constant 0 : i32
    return %c0_i32, %c0_i32_0 : i32, i32
  }
  func.func @transform_5(%arg0: i32, %arg1: i32) -> (i32, i32, i32) {
    %c0_i32 = arith.constant 0 : i32
    %c0_i32_0 = arith.constant 0 : i32
    %c0_i32_1 = arith.constant 0 : i32
    return %c0_i32, %arg0, %c0_i32_0 : i32, i32, i32
  }
}

</mosaic_0001>

<bundles_post_ra>
// kernel: multi_head_attention.2
= control target key start
LH: loop header
LB: loop body
LE: loop exit
PB: predicated region body
PF: predicated region fallthrough
CT: control target
= control target key end

     0   :  { %v352_v0 = vmov 0.0   ;;  %vm353_vm0 = vmmov 0   ;;  %vm47_vm1 = vcmask 261120   ;;  %vm100_vm2 = vcmask 257024   ;;  %s459_s3 = inlined_call_operand.vmem [shape: bf16[3,32,32], index: 3, kind: input, shape index: {}]   ;;  %s460_s0 = inlined_call_operand.vmem [shape: f32[16,32], index: 0, kind: input, shape index: {}]   ;;  %s461_s1 = inlined_call_operand.vmem [shape: f32[16,32], index: 1, kind: input, shape index: {}]   ;;  %s462_s2 = inlined_call_operand.vmem [shape: f32[16,32], index: 2, kind: input, shape index: {}]   ;;  %s463_s4 = inlined_call_operand.vmem [shape: f32[3,1,32], index: 4, kind: input, shape index: {}]   ;;  %s464_s5 = inlined_call_operand.vmem [shape: bf16[3,16,32], index: 5, kind: output, shape index: {}]  }
   0x1   :  { %320 = vmatprep.subr.bf16.mxu0 %v352_v0  ;;  %v346_v1 = vld [vmem:[%s459_s3 + $0x8] sm:$0xff]   ;;  %328 = vmatprep.subr.bf16.mxu1 %v352_v0  ;;  %v347_v2 = vld [vmem:[%s459_s3 + $0x18] sm:$0xff]   ;;  %v348_v3 = vld [vmem:[%s459_s3] sm:$0xff]  }
   0x2   :  { %324 = vmatprep.mubr.msk.bf16.mxu0 %vm353_vm0, %v352_v0  ;;  %332 = vmatprep.mubr.msk.bf16.mxu1 %vm353_vm0, %v352_v0  ;;  %v21_v4 = vld [vmem:[%s460_s0] sm:$0xff]  ;;  %v22_v5 = vld [vmem:[%s460_s0 + $0x8] sm:$0xff]  ;;  %v349_v6 = vld [vmem:[%s459_s3 + $0x10] sm:$0xff]  }
   0x3   :  { %321 = vmatpush3.bf16.msra.mxu0 %v346_v1  ;;  %329 = vmatpush3.bf16.msra.mxu1 %v347_v2  ;;  %v23_v7 = vpack.c.bf16 %v22_v5, %v21_v4  ;;  %v350_v8 = vld [vmem:[%s459_s3 + $0x28] sm:$0xff]   ;;  %v103_v9 = vld [vmem:[%s461_s1] sm:$0xff] }
   0x4   :  { %322 = vmatprep.subr.bf16.mxu0 %v352_v0  ;;  %330 = vmatprep.subr.bf16.mxu1 %v352_v0  ;;  %v104_v10 = vld [vmem:[%s461_s1 + $0x8] sm:$0xff]  ;;  %v351_v12 = vld [vmem:[%s459_s3 + $0x20] sm:$0xff]  }
   0x5   :  { %v105_v11 = vpack.c.bf16 %v104_v10, %v103_v9  ;;  %v186_v13 = vld [vmem:[%s462_s2] sm:$0xff]  ;;  %v187_v14 = vld [vmem:[%s462_s2 + $0x8] sm:$0xff] }
   0x6   :  { %v188_v15 = vpack.c.bf16 %v187_v14, %v186_v13  ;;  %v273_v16 = vld [vmem:[%s463_s4] ss:$0 sm:$0xff]  ;;  %v284_v17 = vld [vmem:[%s463_s4 + $0x1] ss:$0 sm:$0xff]  ;;  %v297_v31 = vld [vmem:[%s463_s4 + $0x2] ss:$0 sm:$0xff] }
   0x7   :  { %323 = vmatpush3.bf16.msra.mxu0 %v348_v3  ;;  %331 = vmatpush3.bf16.msra.mxu1 %v349_v6 }
   0x8   :  { %336 = vmatprep.subr.bf16.mxu0 %v352_v0 }
   0xa   :  { %325 = vmatmul.mubr.msk.bf16.vlgmr.msra.gmra.mxu0 %vm47_vm1, %v23_v7  ;;  %333 = vmatmul.mubr.msk.bf16.vlgmr.msra.gmra.mxu1 %vm47_vm1, %v105_v11 }
   0xb   :  { %337 = vmatpush3.bf16.msra.mxu0 %v350_v8  ;;  %340 = vmatprep.mubr.msk.bf16.mxu0 %vm353_vm0, %v352_v0 }
   0xc   :  { %338 = vmatprep.subr.bf16.mxu0 %v352_v0 }
   0xf   :  { %339 = vmatpush3.bf16.msra.mxu0 %v351_v12 }
  0x12   :  { %341 = vmatmul.mubr.msk.bf16.vlgmr.msra.gmra.mxu0 %vm47_vm1, %v188_v15 }
  0xca   :  { %v85_v18 = vpop.f32.mrf.mxu0  ;;  %v168_v20 = vpop.f32.mrf.mxu1 }
  0xcb   :  { %v86_v19 = vadd.f32 %v273_v16, %v85_v18  ;;  %v169_v22 = vadd.f32 %v284_v17, %v168_v20 }
  0xcc   :  { %v326_v21 = vpop.f32.mrf.mxu0  ;;  %v334_v24 = vpop.f32.mrf.mxu1 }
  0xcd   :  { %v305_v23 = vpack.c.bf16 %v86_v19, %v86_v19  ;;  %v307_v25 = vpack.c.bf16 %v169_v22, %v169_v22 }
  0xce   :  { %v88_v26 = vpop.f32.mrf.mxu0  ;;  %v171_v28 = vpop.f32.mrf.mxu1 }
  0xcf   :  { %101 = vst.msk [vmem:[%s464_s5] sm:$0xf] %vm100_vm2, %v305_v23  ;;  %v89_v27 = vadd.f32 %v273_v16, %v88_v26  ;;  %290 = vst.msk [vmem:[%s464_s5 + $0x8] sm:$0xf] %vm100_vm2, %v307_v25  ;;  %v172_v30 = vadd.f32 %v284_v17, %v171_v28 }
  0xd0   :  { %v327_v29 = vpop.f32.mrf.mxu0  ;;  %v335_v33 = vpop.f32.mrf.mxu1 }
  0xd1   :  { %v306_v32 = vpack.c.bf16 %v89_v27, %v89_v27  ;;  %v308_v34 = vpack.c.bf16 %v172_v30, %v172_v30 }
  0xd2   :  { %v251_v35 = vpop.f32.mrf.mxu0 }
  0xd3   :  { %102 = vst.msk [vmem:[%s464_s5 + $0x4] sm:$0xf] %vm100_vm2, %v306_v32  ;;  %v252_v36 = vadd.f32 %v297_v31, %v251_v35  ;;  %291 = vst.msk [vmem:[%s464_s5 + $0xc] sm:$0xf] %vm100_vm2, %v308_v34 }
  0xd4   :  { %v342_v37 = vpop.f32.mrf.mxu0 }
  0xd5   :  { %v309_v38 = vpack.c.bf16 %v252_v36, %v252_v36 }
  0xd6   :  { %v254_v39 = vpop.f32.mrf.mxu0 }
  0xd7   :  { %303 = vst.msk [vmem:[%s464_s5 + $0x10] sm:$0xf] %vm100_vm2, %v309_v38  ;;  %v255_v40 = vadd.f32 %v297_v31, %v254_v39 }
  0xd8   :  { %v343_v41 = vpop.f32.mrf.mxu0 }
  0xd9   :  { %v310_v42 = vpack.c.bf16 %v255_v40, %v255_v40 }
  0xdb   :  { %304 = vst.msk [vmem:[%s464_s5 + $0x14] sm:$0xf] %vm100_vm2, %v310_v42 }

// kernel: multi_head_attention.3
= control target key start
LH: loop header
LB: loop body
LE: loop exit
PB: predicated region body
PF: predicated region fallthrough
CT: control target
= control target key end

     0   :  { %v1274_v6 = vmov 0.0   ;;  %vm41_vm0 = vcmask 64512   ;;  %s1275_s26 = smov 120   ;;  %vm1276_vm1 = vmmov 0   ;;  %s1480_s0 = inlined_call_operand.vmem [shape: bf16[3,2,8,32], index: 0, kind: input, shape index: {}, may-alias: {0,1,2}]   ;;  %s1481_s1 = inlined_call_operand.vmem [shape: bf16[3,2,8,32], index: 1, kind: input, shape index: {}, may-alias: {0,1,2}]   ;;  %s1482_s2 = inlined_call_operand.vmem [shape: bf16[3,2,8,32], index: 2, kind: input, shape index: {}, may-alias: {0,1,2}]   ;;  %s1483_s3 = inlined_call_operand.vmem [shape: bf16[32,32], index: 3, kind: input, shape index: {}]   ;;  %s1484_s4 = inlined_call_operand.vmem [shape: f32[1,32], index: 4, kind: input, shape index: {}]   ;;  %s1485_s5 = inlined_call_operand.hbm [shape: f32[2,8,32], index: 5, kind: output, shape index: {}]  }
   0x1   :  { %v1047_v0 = vld [vmem:[%s1481_s1 + $0x8] sm:$0xf]  ;;  %v1048_v1 = vld [vmem:[%s1481_s1 + $0xc] sm:$0xf]  ;;  %v35_v3 = vld [vmem:[%s1480_s0] sm:$0xf]  ;;  %1112 = vmatprep.subr.bf16.mxu0 %v1274_v6  ;;  %1118 = vmatprep.subr.bf16.mxu1 %v1274_v6 }
   0x2   :  { %v1054_v2 = vcombine.low %v1047_v0, %v1047_v0  ;;  %v36_v4 = vld [vmem:[%s1480_s0 + $0x4] sm:$0xf]  ;;  %v1053_v5 = vcombine.low %v35_v3, %v35_v3  ;;  %v1057_v7 = vcombine.low %v1048_v1, %v1048_v1  ;;  %v46_v8 = vsel %vm41_vm0, %v1047_v0, 0  ;;  %1114 = vmatprep.mubr.msk.bf16.mxu0 %vm1276_vm1, %v1274_v6 }
   0x3   :  { %v92_v9 = vsel %vm41_vm0, %v1048_v1, 0  ;;  %v1056_v10 = vcombine.low %v36_v4, %v36_v4  ;;  %1113 = vmatpush3.bf16.xpose.msra.mxu0 %v46_v8 }
   0x4   :  { %145 = vrot.lane.b32.xlu0 %v1054_v2, %s1275_s26  ;;  %140 = vrot.lane.b32.xlu1 %v1053_v5, %s1275_s26 }
   0x5   :  { %10 = vsyncpa [#allocation4], 0  ;;  %1119 = vmatpush3.bf16.xpose.msra.mxu1 %v92_v9  ;;  %1120 = vmatprep.mubr.msk.bf16.mxu1 %vm1276_vm1, %v1274_v6  ;;  %s1277_s0 = smov 112   ;;  %s1278_s1 = smov 104   ;;  %v1349_v11 = vld [vmem:[%s1482_s2 + $0x10] sm:$0xf] }
   0x6   :  { %1124 = vmatprep.subr.bf16.mxu0 %v1274_v6  ;;  %1130 = vmatprep.subr.bf16.mxu1 %v1274_v6  ;;  %v1354_v12 = vld [vmem:[%s1482_s2 + $0x14] sm:$0xf]  ;;  %v1065_v13 = vcombine.low %v1349_v11, %v1349_v11  ;;  %vm508_vm2 = vcmask 1043456   ;;  %vm32_vm3 = vcmask 261120   ;;  %s1279_s2 = smov 8   ;;  %s1280_s6 = smov 16  }
   0x7   :  { %v1067_v14 = vcombine.low %v1354_v12, %v1354_v12  ;;  %v510_v41 = vsel %vm508_vm2, %v1349_v11, 0  ;;  %v556_v42 = vsel %vm508_vm2, %v1354_v12, 0  ;;  %33 = vst.msk [vmem:[#allocation2] sm:$0xff] %vm32_vm3, %v1274_v6  ;;  %34 = vst.msk [vmem:[#allocation2 + $0x8] sm:$0xff] %vm32_vm3, %v1274_v6  ;;  %s1281_s11 = smov 24   ;;  %vm722_vm4 = vcmask 130112  }
   0x8   :  { %201 = vrot.lane.b32.xlu0 %v1057_v7, %s1275_s26  ;;  %196 = vrot.lane.b32.xlu1 %v1056_v10, %s1275_s26  ;;  %vm837_vm5 = vcmask 195712   ;;  %vm952_vm6 = vcmask 261312   ;;  %s1282_s13 = smov [#allocation3]  }
   0x9   :  { %s1036_s14 = sshll.u32 %s1282_s13, 4  ;;  %s1037_s14 = int_to_ptr.vmem [resolvable:$true] %s1036_s14 }
   0xa   :  { %1115 = vmatmul.mubr.msk.bf16.vlgmr.msra.gmra.mxu0 %vm41_vm0, %v35_v3  ;;  %s1252_s15 = scalar_lea.vmem %s1037_s14, 256  ;;  %p1257_p1 = scmp.lt.s32.totalorder %s1037_s14, %s1037_s14 }
   0xb   :  { %1126 = vmatprep.mubr.msk.bf16.mxu0 %vm1276_vm1, %v1274_v6  ;;  %p1253_p0 = scmp.ne.s32.totalorder %s1037_s14, %s1252_s15  ;;  %p1258_p2 = scmp.lt.s32.totalorder %s1252_s15, %s1252_s15 }
   0xc   :  { %255 = vrot.lane.b32.xlu0 %v1054_v2, %s1277_s0  ;;  %305 = vrot.lane.b32.xlu1 %v1057_v7, %s1277_s0 }
   0xd   :  { %1121 = vmatmul.mubr.msk.bf16.vlgmr.msra.gmra.mxu1 %vm41_vm0, %v36_v4  ;;  %p1259_p3 = por %p1258_p2, %p1257_p1 }
   0xe   :  { %1132 = vmatprep.mubr.msk.bf16.mxu1 %vm1276_vm1, %v1274_v6 }
   0xf   :  { %p1260_p4 = pnand %p1259_p3, %p1253_p0 }
  0x10   :  { %253 = vrot.lane.b32.xlu0 %v1053_v5, %s1277_s0  ;;  %303 = vrot.lane.b32.xlu1 %v1056_v10, %s1277_s0 }
  0x14   :  { %359 = vrot.lane.b32.xlu0 %v1054_v2, %s1278_s1  ;;  %409 = vrot.lane.b32.xlu1 %v1057_v7, %s1278_s1 }
  0x18   :  { %357 = vrot.lane.b32.xlu0 %v1053_v5, %s1278_s1  ;;  %407 = vrot.lane.b32.xlu1 %v1056_v10, %s1278_s1 }
  0x1c   :  { %611 = vrot.lane.b32.xlu0 %v1065_v13, %s1275_s26  ;;  %662 = vrot.lane.b32.xlu1 %v1067_v14, %s1275_s26 }
  0x20   :  { %729 = vrot.lane.b32.xlu0 %v1065_v13, %s1277_s0  ;;  %777 = vrot.lane.b32.xlu1 %v1067_v14, %s1277_s0 }
  0x24   :  { %844 = vrot.lane.b32.xlu0 %v1065_v13, %s1278_s1  ;;  %892 = vrot.lane.b32.xlu1 %v1067_v14, %s1278_s1 }
  0x76   :  { %v146_v15 = vpop.permute.xlu0 %145  ;;  %v141_v17 = vpop.permute.xlu1 %140 }
  0x77   :  { %v151_v16 = vsel %vm41_vm0, %v146_v15, 0 }
  0x78   :  { %1125 = vmatpush3.bf16.xpose.msra.mxu0 %v151_v16 }
  0x79   :  { %1136 = vmatprep.subr.bf16.mxu0 %v1274_v6 }
  0x7a   :  { %v202_v18 = vpop.permute.xlu0 %201  ;;  %v197_v20 = vpop.permute.xlu1 %196 }
  0x7b   :  { %v207_v19 = vsel %vm41_vm0, %v202_v18, 0 }
  0x7c   :  { %1131 = vmatpush3.bf16.xpose.msra.mxu1 %v207_v19 }
  0x7d   :  { %1142 = vmatprep.subr.bf16.mxu1 %v1274_v6 }
  0x7e   :  { %v256_v21 = vpop.permute.xlu0 %255  ;;  %v306_v23 = vpop.permute.xlu1 %305 }
  0x7f   :  { %v261_v22 = vsel %vm41_vm0, %v256_v21, 0  ;;  %1127 = vmatmul.mubr.msk.bf16.vlgmr.msra.gmra.mxu0 %vm41_vm0, %v141_v17  ;;  %v311_v24 = vsel %vm41_vm0, %v306_v23, 0 }
  0x80   :  { %1137 = vmatpush3.bf16.xpose.msra.mxu0 %v261_v22  ;;  %1138 = vmatprep.mubr.msk.bf16.mxu0 %vm1276_vm1, %v1274_v6 }
  0x81   :  { %1148 = vmatprep.subr.bf16.mxu0 %v1274_v6 }
  0x82   :  { %v254_v25 = vpop.permute.xlu0 %253  ;;  %v304_v26 = vpop.permute.xlu1 %303 }
  0x83   :  { %1133 = vmatmul.mubr.msk.bf16.vlgmr.msra.gmra.mxu1 %vm41_vm0, %v197_v20 }
  0x84   :  { %1143 = vmatpush3.bf16.xpose.msra.mxu1 %v311_v24  ;;  %1144 = vmatprep.mubr.msk.bf16.mxu1 %vm1276_vm1, %v1274_v6 }
  0x85   :  { %1154 = vmatprep.subr.bf16.mxu1 %v1274_v6 }
  0x86   :  { %v360_v27 = vpop.permute.xlu0 %359  ;;  %v410_v29 = vpop.permute.xlu1 %409 }
  0x87   :  { %v365_v28 = vsel %vm41_vm0, %v360_v27, 0  ;;  %1139 = vmatmul.mubr.msk.bf16.vlgmr.msra.gmra.mxu0 %vm41_vm0, %v254_v25  ;;  %v415_v30 = vsel %vm41_vm0, %v410_v29, 0 }
  0x88   :  { %1149 = vmatpush3.bf16.xpose.msra.mxu0 %v365_v28  ;;  %1150 = vmatprep.mubr.msk.bf16.mxu0 %vm1276_vm1, %v1274_v6 }
  0x89   :  { %1160 = vmatprep.subr.bf16.mxu0 %v1274_v6 }
  0x8a   :  { %v358_v31 = vpop.permute.xlu0 %357  ;;  %v408_v32 = vpop.permute.xlu1 %407 }
  0x8b   :  { %1145 = vmatmul.mubr.msk.bf16.vlgmr.msra.gmra.mxu1 %vm41_vm0, %v304_v26 }
  0x8c   :  { %1155 = vmatpush3.bf16.xpose.msra.mxu1 %v415_v30  ;;  %1156 = vmatprep.mubr.msk.bf16.mxu1 %vm1276_vm1, %v1274_v6 }
  0x8d   :  { %1166 = vmatprep.subr.bf16.mxu1 %v1274_v6 }
  0x8f   :  { %1151 = vmatmul.mubr.msk.bf16.vlgmr.msra.gmra.mxu0 %vm41_vm0, %v358_v31 }
  0x90   :  { %1162 = vmatprep.mubr.msk.bf16.mxu0 %vm1276_vm1, %v1274_v6  ;;  %1161 = vmatpush3.bf16.msra.mxu0 %v510_v41 }
  0x91   :  { %1172 = vmatprep.subr.bf16.mxu0 %v1274_v6 }
  0x93   :  { %1157 = vmatmul.mubr.msk.bf16.vlgmr.msra.gmra.mxu1 %vm41_vm0, %v408_v32 }
  0x94   :  { %1168 = vmatprep.mubr.msk.bf16.mxu1 %vm1276_vm1, %v1274_v6  ;;  %1167 = vmatpush3.bf16.msra.mxu1 %v556_v42 }
  0x95   :  { %1178 = vmatprep.subr.bf16.mxu1 %v1274_v6 }
  0xca   :  { %v1392_v33 = vpop.f32.mrf.mxu0 }
  0xcb   :  { %v134_v58 = vsel %vm41_vm0, %v1392_v33, -inf }
  0xcc   :  { %v1116_v35 = vpop.f32.mrf.mxu0 }
  0xcd   :  { %v1394_v34 = vpop.f32.mrf.mxu1 }
  0xce   :  { %v85_v37 = vpop.f32.mrf.mxu0  ;;  %v135_v59 = vsel %vm41_vm0, %v1394_v34, -inf }
  0xcf   :  { %v1122_v36 = vpop.f32.mrf.mxu1  ;;  %v136_v2 = vmax.f32 %v134_v58, %v135_v59  ;;  %v612_v59 = vpop.permute.xlu0 %611 }
  0xd0   :  { %v1117_v39 = vpop.f32.mrf.mxu0 }
  0xd1   :  { %v131_v38 = vpop.f32.mrf.mxu1 }
  0xd3   :  { %v1123_v40 = vpop.f32.mrf.mxu1 }
 0x13f   :  { %v187_v43 = vpop.f32.mrf.mxu0 }
 0x140   :  { %v249_v60 = vsel %vm41_vm0, %v187_v43, -inf }
 0x141   :  { %v1128_v44 = vpop.f32.mrf.mxu0 }
 0x143   :  { %v190_v45 = vpop.f32.mrf.mxu0  ;;  %v243_v46 = vpop.f32.mrf.mxu1 }
 0x144   :  { %v250_v55 = vsel %vm41_vm0, %v243_v46, -inf }
 0x145   :  { %v1129_v47 = vpop.f32.mrf.mxu0  ;;  %v1134_v48 = vpop.f32.mrf.mxu1  ;;  %v251_v62 = vmax.f32 %v249_v60, %v250_v55 }
 0x146   :  { %v663_v60 = vpop.permute.xlu1 %662 }
 0x147   :  { %v246_v49 = vpop.f32.mrf.mxu1  ;;  %v297_v50 = vpop.f32.mrf.mxu0  ;;  %v252_v8 = vmax.f32 %v136_v2, %v251_v62 }
 0x148   :  { %v353_v1 = vsel %vm41_vm0, %v297_v50, -inf }
 0x149   :  { %v1135_v51 = vpop.f32.mrf.mxu1  ;;  %v1140_v52 = vpop.f32.mrf.mxu0 }
 0x14b   :  { %v300_v53 = vpop.f32.mrf.mxu0  ;;  %v347_v54 = vpop.f32.mrf.mxu1 }
 0x14c   :  { %v354_v61 = vsel %vm41_vm0, %v347_v54, -inf }
 0x14d   :  { %v1141_v56 = vpop.f32.mrf.mxu0  ;;  %v1146_v57 = vpop.f32.mrf.mxu1  ;;  %v355_v3 = vmax.f32 %v353_v1, %v354_v61 }
 0x14f   :  { %v350_v63 = vpop.f32.mrf.mxu1  ;;  %v401_v0 = vpop.f32.mrf.mxu0  ;;  %v356_v12 = vmax.f32 %v252_v8, %v355_v3 }
 0x150   :  { %v457_v7 = vsel %vm41_vm0, %v401_v0, -inf  ;;  %v617_v63 = vsel %vm508_vm2, %v612_v59, 0 }
 0x151   :  { %v1147_v4 = vpop.f32.mrf.mxu1  ;;  %v1152_v5 = vpop.f32.mrf.mxu0 }
 0x152   :  { %v730_v5 = vpop.permute.xlu0 %729 }
 0x153   :  { %v404_v9 = vpop.f32.mrf.mxu0  ;;  %v451_v10 = vpop.f32.mrf.mxu1 }
 0x154   :  { %v458_v11 = vsel %vm41_vm0, %v451_v10, -inf }
 0x155   :  { %v459_v13 = vmax.f32 %v457_v7, %v458_v11  ;;  %v1153_v14 = vpop.f32.mrf.mxu0  ;;  %v1158_v15 = vpop.f32.mrf.mxu1 }
 0x156   :  { %v778_v7 = vpop.permute.xlu1 %777  ;;  %v845_v14 = vpop.permute.xlu0 %844 }
 0x157   :  { %v460_v16 = vmax.f32 %v356_v12, %v459_v13  ;;  %v454_v17 = vpop.f32.mrf.mxu1  ;;  %v783_v11 = vsel %vm508_vm2, %v778_v7, 0 }
 0x159   :  { %v461_v18 = vsub.f32 %v1392_v33, %v460_v16  ;;  %v462_v19 = vsub.f32 %v1394_v34, %v460_v16  ;;  %v470_v20 = vsub.f32 %v187_v43, %v460_v16  ;;  %v471_v21 = vsub.f32 %v243_v46, %v460_v16  ;;  %v1159_v22 = vpop.f32.mrf.mxu1 }
 0x15a   :  { %v480_v23 = vsub.f32 %v297_v50, %v460_v16  ;;  %v481_v24 = vsub.f32 %v347_v54, %v460_v16  ;;  %v490_v28 = vsub.f32 %v401_v0, %v460_v16  ;;  %v491_v30 = vsub.f32 %v451_v10, %v460_v16  ;;  %v893_v15 = vpop.permute.xlu1 %892 }
 0x15b   :  { %v463_v25 = vmul.f32 1.442695, %v461_v18  ;;  %v465_v26 = vmul.f32 1.442695, %v462_v19  ;;  %v472_v27 = vmul.f32 1.442695, %v470_v20 }
 0x15c   :  { %v474_v29 = vmul.f32 1.442695, %v471_v21  ;;  %v482_v31 = vmul.f32 1.442695, %v480_v23  ;;  %v484_v32 = vmul.f32 1.442695, %v481_v24 }
 0x15d   :  { %1234 = vpow2.f32 %v463_v25  ;;  %v492_v35 = vmul.f32 1.442695, %v490_v28  ;;  %v494_v33 = vmul.f32 1.442695, %v491_v30  ;;  %v668_v0 = vsel %vm508_vm2, %v663_v60, 0  ;;  %v598_v24 = vld [vmem:[#allocation2] sm:$0xff] }
 0x15e   :  { %1236 = vpow2.f32 %v465_v26  ;;  %v735_v10 = vsel %vm508_vm2, %v730_v5, 0  ;;  %v850_v18 = vsel %vm508_vm2, %v845_v14, 0  ;;  %v898_v19 = vsel %vm508_vm2, %v893_v15, 0  ;;  %v599_v25 = vld [vmem:[#allocation2 + $0x8] sm:$0xff] }
 0x15f   :  { %1238 = vpow2.f32 %v472_v27 }
 0x160   :  { %1240 = vpow2.f32 %v474_v29 }
 0x161   :  { %1242 = vpow2.f32 %v482_v31 }
 0x162   :  { %1244 = vpow2.f32 %v484_v32 }
 0x163   :  { %1246 = vpow2.f32 %v492_v35 }
 0x164   :  { %1248 = vpow2.f32 %v494_v33 }
 0x16a   :  { %v1235_v34 = vpop.eup %1234 }
 0x16b   :  { %v1237_v36 = vpop.eup %1236  ;;  %v467_v37 = vsel %vm41_vm0, %v1235_v34, 0.0 }
 0x16c   :  { %v1239_v38 = vpop.eup %1238  ;;  %v468_v39 = vsel %vm41_vm0, %v1237_v36, 0.0 }
 0x16d   :  { %v1241_v40 = vpop.eup %1240  ;;  %v469_v41 = vadd.f32 %v468_v39, %v467_v37  ;;  %v476_v42 = vsel %vm41_vm0, %v1239_v38, 0.0 }
 0x16e   :  { %v1243_v43 = vpop.eup %1242  ;;  %v477_v44 = vsel %vm41_vm0, %v1241_v40, 0.0 }
 0x16f   :  { %v1245_v45 = vpop.eup %1244  ;;  %v478_v46 = vadd.f32 %v477_v44, %v476_v42  ;;  %v486_v47 = vsel %vm41_vm0, %v1243_v43, 0.0 }
 0x170   :  { %v1247_v48 = vpop.eup %1246  ;;  %v487_v49 = vsel %vm41_vm0, %v1245_v45, 0.0 }
 0x171   :  { %v1249_v50 = vpop.eup %1248  ;;  %v479_v51 = vadd.f32 %v478_v46, %v469_v41  ;;  %v488_v52 = vadd.f32 %v487_v49, %v486_v47  ;;  %v496_v53 = vsel %vm41_vm0, %v1247_v48, 0.0 }
 0x172   :  { %v497_v54 = vsel %vm41_vm0, %v1249_v50, 0.0 }
 0x173   :  { %v489_v55 = vadd.f32 %v488_v52, %v479_v51  ;;  %v498_v56 = vadd.f32 %v497_v54, %v496_v53  ;;  %v1233_v51 = vld [vmem:[%s1483_s3] sm:$0xff]  }
 0x175   :  { %v499_v57 = vadd.f32 %v498_v56, %v489_v55 }
 0x177   :  { %1250 = vrcp.f32 %v499_v57 }
 0x184   :  { %v1251_v58 = vpop.eup %1250 }
 0x185   :  { %v501_v61 = vmul.f32 %v1251_v58, %v1235_v34  ;;  %v502_v62 = vmul.f32 %v1251_v58, %v1237_v36  ;;  %v604_v3 = vmul.f32 %v1251_v58, %v1239_v38  ;;  %v605_v4 = vmul.f32 %v1251_v58, %v1241_v40 }
 0x186   :  { %v725_v12 = vmul.f32 %v1251_v58, %v1243_v43  ;;  %v726_v13 = vmul.f32 %v1251_v58, %v1245_v45  ;;  %v840_v20 = vmul.f32 %v1251_v58, %v1247_v48  ;;  %v841_v21 = vmul.f32 %v1251_v58, %v1249_v50  ;;  %v1232_v48 = vld [vmem:[%s1483_s3 + $0x8] sm:$0xff]  }
 0x187   :  { %v503_v1 = vpack.c.bf16 %v501_v61, %v501_v61  ;;  %v504_v2 = vpack.c.bf16 %v502_v62, %v502_v62  ;;  %v606_v8 = vpack.c.bf16 %v604_v3, %v604_v3  ;;  %v607_v9 = vpack.c.bf16 %v605_v4, %v605_v4 }
 0x188   :  { %v727_v16 = vpack.c.bf16 %v725_v12, %v725_v12  ;;  %v728_v17 = vpack.c.bf16 %v726_v13, %v726_v13  ;;  %v842_v22 = vpack.c.bf16 %v840_v20, %v840_v20  ;;  %v843_v23 = vpack.c.bf16 %v841_v21, %v841_v21 }
 0x189   :  { %1163 = vmatmul.mubr.msk.bf16.vlgmr.msra.gmra.mxu0 %vm41_vm0, %v503_v1  ;;  %1169 = vmatmul.mubr.msk.bf16.vlgmr.msra.gmra.mxu1 %vm41_vm0, %v504_v2 }
 0x18a   :  { %1173 = vmatpush3.bf16.msra.mxu0 %v617_v63  ;;  %1179 = vmatpush3.bf16.msra.mxu1 %v668_v0 }
 0x18b   :  { %1174 = vmatprep.mubr.msk.bf16.mxu0 %vm1276_vm1, %v1274_v6  ;;  %1180 = vmatprep.mubr.msk.bf16.mxu1 %vm1276_vm1, %v1274_v6 }
 0x18c   :  { %1184 = vmatprep.subr.bf16.mxu0 %v1274_v6  ;;  %1190 = vmatprep.subr.bf16.mxu1 %v1274_v6 }
 0x191   :  { %1175 = vmatmul.mubr.msk.bf16.vlgmr.msra.gmra.mxu0 %vm41_vm0, %v606_v8  ;;  %1181 = vmatmul.mubr.msk.bf16.vlgmr.msra.gmra.mxu1 %vm41_vm0, %v607_v9 }
 0x192   :  { %1185 = vmatpush3.bf16.msra.mxu0 %v735_v10  ;;  %1191 = vmatpush3.bf16.msra.mxu1 %v783_v11 }
 0x193   :  { %1186 = vmatprep.mubr.msk.bf16.mxu0 %vm1276_vm1, %v1274_v6  ;;  %1192 = vmatprep.mubr.msk.bf16.mxu1 %vm1276_vm1, %v1274_v6 }
 0x194   :  { %1196 = vmatprep.subr.bf16.mxu0 %v1274_v6  ;;  %1202 = vmatprep.subr.bf16.mxu1 %v1274_v6 }
 0x199   :  { %1187 = vmatmul.mubr.msk.bf16.vlgmr.msra.gmra.mxu0 %vm41_vm0, %v727_v16  ;;  %1193 = vmatmul.mubr.msk.bf16.vlgmr.msra.gmra.mxu1 %vm41_vm0, %v728_v17 }
 0x19a   :  { %1197 = vmatpush3.bf16.msra.mxu0 %v850_v18  ;;  %1203 = vmatpush3.bf16.msra.mxu1 %v898_v19  ;;  %v1073_v19 = vld [vmem:[%s1484_s4] ss:$0 sm:$0xff] }
 0x19b   :  { %1198 = vmatprep.mubr.msk.bf16.mxu0 %vm1276_vm1, %v1274_v6  ;;  %1204 = vmatprep.mubr.msk.bf16.mxu1 %vm1276_vm1, %v1274_v6 }
 0x19c   :  { %1208 = vmatprep.subr.bf16.mxu0 %v1274_v6 }
 0x1a1   :  { %1199 = vmatmul.mubr.msk.bf16.vlgmr.msra.gmra.mxu0 %vm41_vm0, %v842_v22  ;;  %1205 = vmatmul.mubr.msk.bf16.vlgmr.msra.gmra.mxu1 %vm41_vm0, %v843_v23 }
 0x1a2   :  { %1212 = vmatprep.mubr.msk.bf16.mxu0 %vm1276_vm1, %v1274_v6  ;;  %1209 = vmatpush3.bf16.msra.mxu0 %v1232_v48 }
 0x1a3   :  { %1210 = vmatprep.subr.bf16.mxu0 %v1274_v6 }
 0x1a6   :  { %1211 = vmatpush3.bf16.msra.mxu0 %v1233_v51 }
 0x249   :  { %v546_v26 = vpop.f32.mrf.mxu0  ;;  %v592_v27 = vpop.f32.mrf.mxu1 }
 0x24a   :  { %v600_v28 = vadd.f32 %v598_v24, %v546_v26  ;;  %v601_v29 = vadd.f32 %v599_v25, %v592_v27 }
 0x24b   :  { %v1164_v30 = vpop.f32.mrf.mxu0  ;;  %v1170_v31 = vpop.f32.mrf.mxu1 }
 0x24c   :  { %602 = vst.msk [vmem:[#allocation2] sm:$0xff] %vm41_vm0, %v600_v28  ;;  %603 = vst.msk [vmem:[#allocation2 + $0x8] sm:$0xff] %vm41_vm0, %v601_v29 }
 0x24d   :  { %v549_v32 = vpop.f32.mrf.mxu0  ;;  %v595_v35 = vpop.f32.mrf.mxu1 }
 0x24f   :  { %v1165_v33 = vpop.f32.mrf.mxu0  ;;  %v1171_v34 = vpop.f32.mrf.mxu1 }
 0x251   :  { %v653_v36 = vpop.f32.mrf.mxu0  ;;  %v704_v37 = vpop.f32.mrf.mxu1 }
 0x252   :  { %716 = vrot.lane.b32.xlu1 %v704_v37, %s1279_s2  ;;  %714 = vrot.lane.b32.xlu0 %v653_v36, %s1279_s2 }
 0x253   :  { %v1176_v38 = vpop.f32.mrf.mxu0  ;;  %v1182_v39 = vpop.f32.mrf.mxu1  ;;  %v711_v63 = vld [vmem:[#allocation2 + $0x8] sm:$0xff]  ;;  %v710_v1 = vld [vmem:[#allocation2] sm:$0xff] }
 0x255   :  { %v656_v40 = vpop.f32.mrf.mxu0  ;;  %v707_v41 = vpop.f32.mrf.mxu1 }
 0x257   :  { %v1177_v42 = vpop.f32.mrf.mxu0  ;;  %v1183_v43 = vpop.f32.mrf.mxu1 }
 0x259   :  { %v771_v44 = vpop.f32.mrf.mxu0  ;;  %v819_v45 = vpop.f32.mrf.mxu1 }
 0x25a   :  { %831 = vrot.lane.b32.xlu1 %v819_v45, %s1280_s6  ;;  %829 = vrot.lane.b32.xlu0 %v771_v44, %s1280_s6 }
 0x25b   :  { %v1188_v46 = vpop.f32.mrf.mxu0  ;;  %v1194_v47 = vpop.f32.mrf.mxu1 }
 0x25d   :  { %v774_v49 = vpop.f32.mrf.mxu0  ;;  %v822_v50 = vpop.f32.mrf.mxu1 }
 0x25f   :  { %v1189_v52 = vpop.f32.mrf.mxu0  ;;  %v1195_v53 = vpop.f32.mrf.mxu1 }
 0x261   :  { %v886_v54 = vpop.f32.mrf.mxu0  ;;  %v934_v55 = vpop.f32.mrf.mxu1 }
 0x262   :  { %946 = vrot.lane.b32.xlu1 %v934_v55, %s1281_s11  ;;  %944 = vrot.lane.b32.xlu0 %v886_v54, %s1281_s11 }
 0x263   :  { %v1200_v56 = vpop.f32.mrf.mxu0  ;;  %v1206_v57 = vpop.f32.mrf.mxu1 }
 0x265   :  { %v889_v58 = vpop.f32.mrf.mxu0  ;;  %v937_v59 = vpop.f32.mrf.mxu1 }
 0x267   :  { %v1201_v60 = vpop.f32.mrf.mxu0  ;;  %v1207_v61 = vpop.f32.mrf.mxu1 }
 0x2c4   :  { %v717_v62 = vpop.permute.xlu1 %716  ;;  %v715_v0 = vpop.permute.xlu0 %714 }
 0x2c5   :  { %v721_v6 = vadd.f32 %v717_v62, %v711_v63  ;;  %v720_v2 = vadd.f32 %v715_v0, %v710_v1 }
 0x2c7   :  { %724 = vst.msk [vmem:[#allocation2 + $0x8] sm:$0xff] %vm722_vm4, %v721_v6  ;;  %723 = vst.msk [vmem:[#allocation2] sm:$0xff] %vm722_vm4, %v720_v2 }
 0x2cc   :  { %v832_v3 = vpop.permute.xlu1 %831  ;;  %v830_v5 = vpop.permute.xlu0 %829 }
 0x2ce   :  { %v826_v4 = vld [vmem:[#allocation2 + $0x8] sm:$0xff]  ;;  %v825_v7 = vld [vmem:[#allocation2] sm:$0xff] }
 0x2cf   :  { %v836_v8 = vadd.f32 %v832_v3, %v826_v4  ;;  %v835_v9 = vadd.f32 %v830_v5, %v825_v7 }
 0x2d1   :  { %839 = vst.msk [vmem:[#allocation2 + $0x8] sm:$0xff] %vm837_vm5, %v836_v8  ;;  %838 = vst.msk [vmem:[#allocation2] sm:$0xff] %vm837_vm5, %v835_v9 }
 0x2d4   :  { %v947_v10 = vpop.permute.xlu1 %946  ;;  %v945_v12 = vpop.permute.xlu0 %944 }
 0x2d8   :  { %v941_v11 = vld [vmem:[#allocation2 + $0x8] sm:$0xff]  ;;  %v940_v13 = vld [vmem:[#allocation2] sm:$0xff] }
 0x2d9   :  { %v951_v14 = vadd.f32 %v947_v10, %v941_v11  ;;  %v950_v15 = vadd.f32 %v945_v12, %v940_v13 }
 0x2db   :  { %954 = vst.msk [vmem:[#allocation2 + $0x8] sm:$0xff] %vm952_vm6, %v951_v14  ;;  %953 = vst.msk [vmem:[#allocation2] sm:$0xff] %vm952_vm6, %v950_v15 }
 0x2e2   :  { %v958_v16 = vld [vmem:[#allocation2] sm:$0xff]  ;;  %v959_v17 = vld [vmem:[#allocation2 + $0x8] sm:$0xff] }
 0x2e3   :  { %v960_v18 = vpack.c.bf16 %v959_v17, %v958_v16 }
 0x2e5   :  { %1213 = vmatmul.mubr.msk.bf16.vlgmr.msra.gmra.mxu0 %vm32_vm3, %v960_v18 }
 0x3a5   :  { %v1022_v20 = vpop.f32.mrf.mxu0 }
 0x3a6   :  { %v1023_v21 = vadd.f32 %v1073_v19, %v1022_v20 }
 0x3a7   :  { %v1214_v22 = vpop.f32.mrf.mxu0 }
 0x3a8   :  { %1029 = vst.msk [vmem:[#allocation3] sm:$0xff] %vm32_vm3, %v1023_v21 }
 0x3a9   :  { %v1025_v23 = vpop.f32.mrf.mxu0 }
 0x3aa   :  { %v1026_v24 = vadd.f32 %v1073_v19, %v1025_v23 }
 0x3ab   :  { %v1215_v25 = vpop.f32.mrf.mxu0 }
 0x3ac   :  { %1030 = vst.msk [vmem:[#allocation3 + $0x8] sm:$0xff] %vm32_vm3, %v1026_v24 }
 0x3ad   :  { %1263 = shalt.err (!%p1260_p4)
}
 0x3ae   :  { %s1283_s4 = smov 128  }
 0x3af   :  { %1042 = dma.vmem_to_hbm [thread:$0]  %s1037_s14, 256, %s1485_s5, [#allocation4], %s1283_s4, %s1283_s4, %s1279_s2  }
 0x3b0   :  { %1272 = dma.done.wait [#allocation4], 256  }
 0x3b1   :  { %1273 = vsyncadd [#allocation4], 4294967040 }
 0x3b2   :  { %1046 = vsyncpa [#allocation4], 1 }

</bundles_post_ra>
